<compile_context>
chip_gen: v7x
topology: tpu7x:2x2x1
jax: 0.10.0
libtpu: 0.0.40
codegen_flags: <defaults>
</compile_context>

<pallas_src>
import functools

import jax
import jax.numpy as jnp
from jax import lax
from jax.experimental import pallas as pl
from jax.experimental.pallas import tpu as pltpu


def _round_up(x, m):
    return ((x + m - 1) // m) * m


def _resblock_kernel(x_ref, a_ref, mask_ref, b1_ref, w2b_ref, b2_ref, o_ref, *,
                     W, matmul_dtype):
    # x_ref:    (Rp, HWp)          Rp = round_up(nb*Cin, 8) image-channel planes
    # a_ref:    (Mp, 9*Rp)         3x3 conv weights, block-diag over images, tap-major
    # mask_ref: (9, HWp)           0/1 border masks per tap (also zero padded lanes)
    # b1_ref:   (Mp, 1)
    # w2b_ref:  (Rp, Mp)           1x1 conv weights, block-diag over images
    # b2_ref:   (Rp, 1)
    # o_ref:    (Rp, HWp)
    Rp, HWp = x_ref.shape

    x = x_ref[...].astype(jnp.float32)           # (Rp, HWp)
    xr = jnp.maximum(x, 0.0)                     # ReLU before the 3x3 conv

    # im2col via 9 lane-rotations (XLU slot) of ReLU(x), with 0/1 border masks killing
    # out-of-image neighbours and roll wrap-around.  Each row is an independent
    # image-channel plane; roll along axis=1 never mixes rows.
    cols = []
    tap = 0
    for dy in (-1, 0, 1):
        for dx in (-1, 0, 1):
            s = dy * W + dx                      # want shifted[hw] = xr[hw + s]
            if s == 0:
                # Center tap: mask is all ones in-image and x is already zero in
                # padded rows/lanes -> skip the mask multiply entirely.
                cols.append(xr)
            else:
                shifted = pltpu.roll(xr, shift=(-s) % HWp, axis=1)
                cols.append(shifted * mask_ref[tap])
            tap += 1
    s_mat = jnp.concatenate(cols, axis=0)        # (9*Rp, HWp), Rp % 8 == 0 -> aligned

    # 3x3 conv == one matmul over (tap, image, cin); bias + ReLU.
    h = jnp.dot(a_ref[...].astype(matmul_dtype), s_mat.astype(matmul_dtype),
                preferred_element_type=jnp.float32)                  # (Mp, HWp)
    h = jnp.maximum(h + b1_ref[...], 0.0)

    # 1x1 conv == one matmul over (image, cmid); bias + residual (pre-ReLU x).
    out = jnp.dot(w2b_ref[...].astype(matmul_dtype), h.astype(matmul_dtype),
                  preferred_element_type=jnp.float32) + b2_ref[...]   # (Rp, HWp)
    o_ref[...] = (out + x).astype(o_ref.dtype)   # lane-dense, unmasked store


def _pick_images_per_step(N, Cin, Cmid):
    """Largest nb that (a) divides N, (b) keeps the grid >= 2 steps so both v7x
    TensorCores get work, and (c) keeps the kron block-diagonal matmuls within one
    native MXU tile: nb*Cmid <= 128 and 9*nb*Cin <= 128 (conservative on all gens)."""
    cap = max(1, min(128 // max(1, Cmid), 128 // max(1, 9 * Cin)))
    best = 1
    for nb in range(1, N + 1):
        if N % nb == 0 and nb <= cap and N // nb >= 2:
            best = nb
    return best


def resblock(x_nchw, w1, b1, w2, b2, *, images_per_step=None,
             matmul_dtype=jnp.float32):
    """PyTorch-equivalent ResBlock.forward on NCHW input.

    w1: (3, 3, Cin, Cmid) HWIO;  b1: (Cmid,);  w2: (Cmid, Cin);  b2: (Cin,).
    matmul_dtype=jnp.bfloat16 enables bf16 MXU operands on v6e/v7x (f32 accumulate);
    default f32 keeps 1e-4 accuracy for these tiny channel counts.
    """
    N, Cin, H, W = x_nchw.shape
    Cmid = w1.shape[3]
    HW = H * W
    HWp = max(_round_up(HW, 128), 128)           # lane-dense output (unmasked vst)

    nb = (_pick_images_per_step(N, Cin, Cmid)
          if images_per_step is None else images_per_step)
    assert N % nb == 0, "images_per_step must divide N"
    steps = N // nb
    R = nb * Cin
    Rp = _round_up(R, 8)                         # sublane-aligned rows per step
    Mp = _round_up(nb * Cmid, 8)

    f32 = jnp.float32

    # Input layout: (N, C, H, W) -> (steps, Rp, HWp).  Pure row-major reshape when no
    # padding is required; otherwise a tiny zero-pad (padded rows/lanes produce zeros).
    x3 = x_nchw.reshape(steps, R, HW)
    if Rp != R or HWp != HW:
        x3 = jnp.pad(x3, ((0, 0), (0, Rp - R), (0, HWp - HW)))
    x2d = x3.reshape(steps * Rp, HWp)

    # Pre-pack weights (tiny, done once by XLA outside the kernel); zero-pad to the
    # aligned row counts so padded rows contribute/receive exact zeros.
    eye = jnp.eye(nb, dtype=f32)
    w_taps = w1.astype(f32).reshape(9, Cin, Cmid)         # tap index = ky*3 + kx
    blocks = []
    for t in range(9):
        blk = jnp.kron(eye, w_taps[t].T)                  # (nb*Cmid, nb*Cin)
        blocks.append(jnp.pad(blk, ((0, Mp - nb * Cmid), (0, Rp - R))))
    a_mat = jnp.concatenate(blocks, axis=1).astype(matmul_dtype)       # (Mp, 9*Rp)
    w2b = jnp.pad(jnp.kron(eye, w2.astype(f32).T),
                  ((0, Rp - R), (0, Mp - nb * Cmid))).astype(matmul_dtype)  # (Rp, Mp)
    b1c = jnp.pad(jnp.tile(b1.astype(f32), nb), (0, Mp - nb * Cmid)).reshape(Mp, 1)
    b2c = jnp.pad(jnp.tile(b2.astype(f32), nb), (0, Rp - R)).reshape(Rp, 1)

    # Per-tap 0/1 border masks (also kill roll wrap-around and padded lanes).
    lane = jnp.arange(HWp, dtype=jnp.int32)
    hh, ww = lane // W, lane % W
    in_img = lane < HW
    masks = []
    for dy in (-1, 0, 1):
        for dx in (-1, 0, 1):
            ok = in_img & (hh + dy >= 0) & (hh + dy < H) & (ww + dx >= 0) & (ww + dx < W)
            masks.append(ok.astype(f32))
    mask_mat = jnp.stack(masks, axis=0)                   # (9, HWp)

    # Explicit VMEM budget (covers v7x's 64 MiB VMEM as well as v5e/v6e's 128 MiB):
    # double-buffered in/out blocks + im2col matrix (+ concat temp) + h + residents.
    welt = jnp.dtype(matmul_dtype).itemsize
    vmem_bytes = (
        2 * 2 * Rp * HWp * 4            # double-buffered input + output blocks
        + 2 * 9 * Rp * HWp * 4          # s_mat + concat temporaries
        + 2 * Mp * HWp * 4              # h + temporaries
        + (a_mat.size + w2b.size) * welt
        + (mask_mat.size + b1c.size + b2c.size) * 4
    )
    vmem_limit = int(max(32 << 20, min(2 * vmem_bytes, 48 << 20)))

    kernel = functools.partial(_resblock_kernel, W=W, matmul_dtype=matmul_dtype)
    out2d = pl.pallas_call(
        kernel,
        out_shape=jax.ShapeDtypeStruct((steps * Rp, HWp), x_nchw.dtype),
        grid_spec=pltpu.PrefetchScalarGridSpec(
            num_scalar_prefetch=0,
            grid=(steps,),
            in_specs=[
                pl.BlockSpec((Rp, HWp), lambda i: (i, 0)),
                # Constant index maps: weights/masks/biases DMA'd once, stay resident.
                pl.BlockSpec(a_mat.shape, lambda i: (0, 0)),
                pl.BlockSpec(mask_mat.shape, lambda i: (0, 0)),
                pl.BlockSpec(b1c.shape, lambda i: (0, 0)),
                pl.BlockSpec(w2b.shape, lambda i: (0, 0)),
                pl.BlockSpec(b2c.shape, lambda i: (0, 0)),
            ],
            out_specs=pl.BlockSpec((Rp, HWp), lambda i: (i, 0)),
        ),
        compiler_params=pltpu.CompilerParams(
            dimension_semantics=("parallel",),
            vmem_limit_bytes=vmem_limit),
    )(x2d, a_mat, mask_mat, b1c, w2b, b2c)

    out = out2d.reshape(steps, Rp, HWp)[:, :R, :HW]
    return out.reshape(N, Cin, H, W)


def resblock_ref(x_nchw, w1, b1, w2, b2):
    """Plain-JAX reference (mirrors the PyTorch module, NCHW)."""
    Cmid, Cin = w2.shape
    y = jnp.maximum(x_nchw, 0.0)
    y = lax.conv_general_dilated(
        y, w1, (1, 1), "SAME",
        dimension_numbers=("NCHW", "HWIO", "NCHW")) + b1.reshape(1, -1, 1, 1)
    y = jnp.maximum(y, 0.0)
    y = lax.conv_general_dilated(
        y, w2.reshape(1, 1, Cmid, Cin), (1, 1), "SAME",
        dimension_numbers=("NCHW", "HWIO", "NCHW")) + b2.reshape(1, -1, 1, 1)
    return y + x_nchw


if __name__ == "__main__":
    N, Cin, Cmid, H, W = 2, 4, 8, 16, 16   # in_channel=4, channel=8

    key = jax.random.PRNGKey(0)
    k1, k2, k3, k4, k5 = jax.random.split(key, 5)
    x_nchw = jax.random.normal(k1, (N, Cin, H, W), jnp.float32)
    w1 = jax.random.normal(k2, (3, 3, Cin, Cmid), jnp.float32) * 0.1
    b1 = jax.random.normal(k3, (Cmid,), jnp.float32) * 0.1
    w2 = jax.random.normal(k4, (Cmid, Cin), jnp.float32) * 0.1
    b2 = jax.random.normal(k5, (Cin,), jnp.float32) * 0.1

    out = resblock(x_nchw, w1, b1, w2, b2)
    out = jax.block_until_ready(out)

    ref = resblock_ref(x_nchw, w1, b1, w2, b2)
    assert out.shape == (N, Cin, H, W)
    assert jnp.allclose(out, ref, atol=1e-4, rtol=1e-4), "mismatch vs reference"

    print("KERNEL_OK")
</pallas_src>

<mosaic_0001>
module attributes {stable_mosaic.version = 11 : i64} {
  func.func @_resblock_kernel(%arg0: i32, %arg1: memref<8x256xf32, #tpu.memory_space<vmem>>, %arg2: memref<8x72xf32, #tpu.memory_space<vmem>>, %arg3: memref<9x256xf32, #tpu.memory_space<vmem>>, %arg4: memref<8x1xf32, #tpu.memory_space<vmem>>, %arg5: memref<8x8xf32, #tpu.memory_space<vmem>>, %arg6: memref<8x1xf32, #tpu.memory_space<vmem>>, %arg7: memref<8x256xf32, #tpu.memory_space<vmem>>) attributes {dimension_semantics = [#tpu.dimension_semantics<parallel>], iteration_bounds = array<i64: 2>, scalar_prefetch = 0 : i64, scratch_operands = 0 : i64, tpu.core_type = #tpu.core_type<tc>, window_params = [{transform_indices = @transform_0, window_bounds = array<i64: 8, 256>}, {pipeline_mode = #tpu.pipeline_mode<synchronous>, transform_indices = @transform_1, window_bounds = array<i64: 8, 72>}, {pipeline_mode = #tpu.pipeline_mode<synchronous>, transform_indices = @transform_2, window_bounds = array<i64: 9, 256>}, {pipeline_mode = #tpu.pipeline_mode<synchronous>, transform_indices = @transform_3, window_bounds = array<i64: 8, 1>}, {pipeline_mode = #tpu.pipeline_mode<synchronous>, transform_indices = @transform_4, window_bounds = array<i64: 8, 8>}, {pipeline_mode = #tpu.pipeline_mode<synchronous>, transform_indices = @transform_5, window_bounds = array<i64: 8, 1>}, {transform_indices = @transform_6, window_bounds = array<i64: 8, 256>}]} {
    %c0 = arith.constant 0 : index
    %c0_0 = arith.constant 0 : index
    %0 = vector.load %arg1[%c0, %c0_0] : memref<8x256xf32, #tpu.memory_space<vmem>>, vector<8x256xf32>
    %cst = arith.constant 0.000000e+00 : f32
    %1 = vector.broadcast %cst : f32 to vector<8x256xf32>
    %2 = arith.maximumf %0, %1 : vector<8x256xf32>
    %c17_i32 = arith.constant 17 : i32
    %3 = tpu.dynamic_rotate %2 by %c17_i32 dim 1 : vector<8x256xf32>, i32 -> vector<8x256xf32>
    %c0_1 = arith.constant 0 : index
    %c0_2 = arith.constant 0 : index
    %4 = vector.load %arg3[%c0_1, %c0_2] : memref<9x256xf32, #tpu.memory_space<vmem>>, vector<1x256xf32>
    %5 = vector.shape_cast %4 : vector<1x256xf32> to vector<256xf32>
    %6 = vector.shape_cast %5 : vector<256xf32> to vector<1x256xf32>
    %7 = vector.broadcast %6 : vector<1x256xf32> to vector<8x256xf32>
    %8 = arith.mulf %3, %7 : vector<8x256xf32>
    %c16_i32 = arith.constant 16 : i32
    %9 = tpu.dynamic_rotate %2 by %c16_i32 dim 1 : vector<8x256xf32>, i32 -> vector<8x256xf32>
    %c1 = arith.constant 1 : index
    %c0_3 = arith.constant 0 : index
    %10 = vector.load %arg3[%c1, %c0_3] : memref<9x256xf32, #tpu.memory_space<vmem>>, vector<1x256xf32>
    %11 = vector.shape_cast %10 : vector<1x256xf32> to vector<256xf32>
    %12 = vector.shape_cast %11 : vector<256xf32> to vector<1x256xf32>
    %13 = vector.broadcast %12 : vector<1x256xf32> to vector<8x256xf32>
    %14 = arith.mulf %9, %13 : vector<8x256xf32>
    %c15_i32 = arith.constant 15 : i32
    %15 = tpu.dynamic_rotate %2 by %c15_i32 dim 1 : vector<8x256xf32>, i32 -> vector<8x256xf32>
    %c2 = arith.constant 2 : index
    %c0_4 = arith.constant 0 : index
    %16 = vector.load %arg3[%c2, %c0_4] : memref<9x256xf32, #tpu.memory_space<vmem>>, vector<1x256xf32>
    %17 = vector.shape_cast %16 : vector<1x256xf32> to vector<256xf32>
    %18 = vector.shape_cast %17 : vector<256xf32> to vector<1x256xf32>
    %19 = vector.broadcast %18 : vector<1x256xf32> to vector<8x256xf32>
    %20 = arith.mulf %15, %19 : vector<8x256xf32>
    %c1_i32 = arith.constant 1 : i32
    %21 = tpu.dynamic_rotate %2 by %c1_i32 dim 1 : vector<8x256xf32>, i32 -> vector<8x256xf32>
    %c3 = arith.constant 3 : index
    %c0_5 = arith.constant 0 : index
    %22 = vector.load %arg3[%c3, %c0_5] : memref<9x256xf32, #tpu.memory_space<vmem>>, vector<1x256xf32>
    %23 = vector.shape_cast %22 : vector<1x256xf32> to vector<256xf32>
    %24 = vector.shape_cast %23 : vector<256xf32> to vector<1x256xf32>
    %25 = vector.broadcast %24 : vector<1x256xf32> to vector<8x256xf32>
    %26 = arith.mulf %21, %25 : vector<8x256xf32>
    %c255_i32 = arith.constant 255 : i32
    %27 = tpu.dynamic_rotate %2 by %c255_i32 dim 1 : vector<8x256xf32>, i32 -> vector<8x256xf32>
    %c5 = arith.constant 5 : index
    %c0_6 = arith.constant 0 : index
    %28 = vector.load %arg3[%c5, %c0_6] : memref<9x256xf32, #tpu.memory_space<vmem>>, vector<1x256xf32>
    %29 = vector.shape_cast %28 : vector<1x256xf32> to vector<256xf32>
    %30 = vector.shape_cast %29 : vector<256xf32> to vector<1x256xf32>
    %31 = vector.broadcast %30 : vector<1x256xf32> to vector<8x256xf32>
    %32 = arith.mulf %27, %31 : vector<8x256xf32>
    %c241_i32 = arith.constant 241 : i32
    %33 = tpu.dynamic_rotate %2 by %c241_i32 dim 1 : vector<8x256xf32>, i32 -> vector<8x256xf32>
    %c6 = arith.constant 6 : index
    %c0_7 = arith.constant 0 : index
    %34 = vector.load %arg3[%c6, %c0_7] : memref<9x256xf32, #tpu.memory_space<vmem>>, vector<1x256xf32>
    %35 = vector.shape_cast %34 : vector<1x256xf32> to vector<256xf32>
    %36 = vector.shape_cast %35 : vector<256xf32> to vector<1x256xf32>
    %37 = vector.broadcast %36 : vector<1x256xf32> to vector<8x256xf32>
    %38 = arith.mulf %33, %37 : vector<8x256xf32>
    %c240_i32 = arith.constant 240 : i32
    %39 = tpu.dynamic_rotate %2 by %c240_i32 dim 1 : vector<8x256xf32>, i32 -> vector<8x256xf32>
    %c7 = arith.constant 7 : index
    %c0_8 = arith.constant 0 : index
    %40 = vector.load %arg3[%c7, %c0_8] : memref<9x256xf32, #tpu.memory_space<vmem>>, vector<1x256xf32>
    %41 = vector.shape_cast %40 : vector<1x256xf32> to vector<256xf32>
    %42 = vector.shape_cast %41 : vector<256xf32> to vector<1x256xf32>
    %43 = vector.broadcast %42 : vector<1x256xf32> to vector<8x256xf32>
    %44 = arith.mulf %39, %43 : vector<8x256xf32>
    %c239_i32 = arith.constant 239 : i32
    %45 = tpu.dynamic_rotate %2 by %c239_i32 dim 1 : vector<8x256xf32>, i32 -> vector<8x256xf32>
    %c8 = arith.constant 8 : index
    %c0_9 = arith.constant 0 : index
    %46 = vector.load %arg3[%c8, %c0_9] : memref<9x256xf32, #tpu.memory_space<vmem>>, vector<1x256xf32>
    %47 = vector.shape_cast %46 : vector<1x256xf32> to vector<256xf32>
    %48 = vector.shape_cast %47 : vector<256xf32> to vector<1x256xf32>
    %49 = vector.broadcast %48 : vector<1x256xf32> to vector<8x256xf32>
    %50 = arith.mulf %45, %49 : vector<8x256xf32>
    %51 = tpu.concatenate %8, %14, %20, %26, %2, %32, %38, %44, %50 in 0 : vector<8x256xf32>, vector<8x256xf32>, vector<8x256xf32>, vector<8x256xf32>, vector<8x256xf32>, vector<8x256xf32>, vector<8x256xf32>, vector<8x256xf32>, vector<8x256xf32> -> vector<72x256xf32>
    %c0_10 = arith.constant 0 : index
    %c0_11 = arith.constant 0 : index
    %52 = vector.load %arg2[%c0_10, %c0_11] : memref<8x72xf32, #tpu.memory_space<vmem>>, vector<8x72xf32>
    %cst_12 = arith.constant dense<0.000000e+00> : vector<8x256xf32>
    %53 = tpu.matmul %52, %51, %cst_12 {dimension_numbers = #tpu.dot_dimension_numbers<[1], [0], [0], [1], [0, 0, 1, 1], [], []>} : vector<8x72xf32>, vector<72x256xf32>, vector<8x256xf32> -> vector<8x256xf32>
    %c0_13 = arith.constant 0 : index
    %c0_14 = arith.constant 0 : index
    %54 = vector.load %arg4[%c0_13, %c0_14] : memref<8x1xf32, #tpu.memory_space<vmem>>, vector<8x1xf32>
    %55 = vector.broadcast %54 : vector<8x1xf32> to vector<8x256xf32>
    %56 = arith.addf %53, %55 : vector<8x256xf32>
    %cst_15 = arith.constant 0.000000e+00 : f32
    %57 = vector.broadcast %cst_15 : f32 to vector<8x256xf32>
    %58 = arith.maximumf %56, %57 : vector<8x256xf32>
    %c0_16 = arith.constant 0 : index
    %c0_17 = arith.constant 0 : index
    %59 = vector.load %arg5[%c0_16, %c0_17] : memref<8x8xf32, #tpu.memory_space<vmem>>, vector<8x8xf32>
    %cst_18 = arith.constant dense<0.000000e+00> : vector<8x256xf32>
    %60 = tpu.matmul %59, %58, %cst_18 {dimension_numbers = #tpu.dot_dimension_numbers<[1], [0], [0], [1], [0, 0, 1, 1], [], []>} : vector<8x8xf32>, vector<8x256xf32>, vector<8x256xf32> -> vector<8x256xf32>
    %c0_19 = arith.constant 0 : index
    %c0_20 = arith.constant 0 : index
    %61 = vector.load %arg6[%c0_19, %c0_20] : memref<8x1xf32, #tpu.memory_space<vmem>>, vector<8x1xf32>
    %62 = vector.broadcast %61 : vector<8x1xf32> to vector<8x256xf32>
    %63 = arith.addf %60, %62 : vector<8x256xf32>
    %64 = arith.addf %63, %0 : vector<8x256xf32>
    %c0_21 = arith.constant 0 : index
    %c0_22 = arith.constant 0 : index
    %65 = vector.load %arg7[%c0_21, %c0_22] : memref<8x256xf32, #tpu.memory_space<vmem>>, vector<8x256xf32>
    tpu.vector_store %arg7[%c0_21, %c0_22], %64 {strides = array<i32>} : memref<8x256xf32, #tpu.memory_space<vmem>>, vector<8x256xf32>,
    return
  }
  func.func @transform_0(%arg0: i32) -> (i32, i32) {
    %c0_i32 = arith.constant 0 : i32
    %c0_i32_0 = arith.constant 0 : i32
    return %arg0, %c0_i32 : i32, i32
  }
  func.func @transform_1(%arg0: i32) -> (i32, i32) {
    %c0_i32 = arith.constant 0 : i32
    %c0_i32_0 = arith.constant 0 : i32
    %c0_i32_1 = arith.constant 0 : i32
    return %c0_i32, %c0_i32_0 : i32, i32
  }
  func.func @transform_2(%arg0: i32) -> (i32, i32) {
    %c0_i32 = arith.constant 0 : i32
    %c0_i32_0 = arith.constant 0 : i32
    %c0_i32_1 = arith.constant 0 : i32
    return %c0_i32, %c0_i32_0 : i32, i32
  }
  func.func @transform_3(%arg0: i32) -> (i32, i32) {
    %c0_i32 = arith.constant 0 : i32
    %c0_i32_0 = arith.constant 0 : i32
    %c0_i32_1 = arith.constant 0 : i32
    return %c0_i32, %c0_i32_0 : i32, i32
  }
  func.func @transform_4(%arg0: i32) -> (i32, i32) {
    %c0_i32 = arith.constant 0 : i32
    %c0_i32_0 = arith.constant 0 : i32
    %c0_i32_1 = arith.constant 0 : i32
    return %c0_i32, %c0_i32_0 : i32, i32
  }
  func.func @transform_5(%arg0: i32) -> (i32, i32) {
    %c0_i32 = arith.constant 0 : i32
    %c0_i32_0 = arith.constant 0 : i32
    %c0_i32_1 = arith.constant 0 : i32
    return %c0_i32, %c0_i32_0 : i32, i32
  }
  func.func @transform_6(%arg0: i32) -> (i32, i32) {
    %c0_i32 = arith.constant 0 : i32
    %c0_i32_0 = arith.constant 0 : i32
    return %arg0, %c0_i32 : i32, i32
  }
}

</mosaic_0001>

<bundles_post_ra>
// kernel: tpu_custom_call.1
= control target key start
LH: loop header
LB: loop body
LE: loop exit
PB: predicated region body
PF: predicated region fallthrough
CT: control target
= control target key end

     0   :  { %11 = vsyncpa [#allocation3], 0  ;;  %s1288_s0 = inlined_call_operand.hbm [shape: f32[16,256], index: 0, kind: input, shape index: {}]   ;;  %s1289_s1 = inlined_call_operand.vmem [shape: f32[8,72], index: 1, kind: input, shape index: {}]   ;;  %s1290_s2 = inlined_call_operand.hbm [shape: f32[9,256], index: 2, kind: input, shape index: {}]   ;;  %s1291_s3 = inlined_call_operand.vmem [shape: f32[8,1], index: 3, kind: input, shape index: {}]   ;;  %s1292_s4 = inlined_call_operand.vmem [shape: f32[8,8], index: 4, kind: input, shape index: {}]   ;;  %s1293_s5 = inlined_call_operand.vmem [shape: f32[8,1], index: 5, kind: input, shape index: {}]   ;;  %s1294_s6 = inlined_call_operand.hbm [shape: f32[16,256], index: 6, kind: output, shape index: {}]  }
   0x1   :  { %13 = vsyncpa [#allocation3 + $0x1], 0 }
   0x2   :  { %14 = vsyncpa [#allocation6], 0 }
   0x3   :  { %15 = vsyncpa [#allocation4], 0 }
   0x4   :  { %17 = vsyncpa [#allocation4 + $0x1], 0  ;;  %s1016_s21 = smov 0   ;;  %s1018_s22 = smov 0  }
   0x5   :  { %s1020_s23 = smov 0   ;;  %s1022_s24 = smov 0  }
   0x6 LB: > { %s1037_s25 = sadd.s32 4294967295, %s964_s24   ;;  %s729_s26 = sadd.s32 4294967294, %s964_s24   ;;  %s964_s24 = sphi %s1022_s24, %s1314_s24   ;;  %s960_s23 = sphi %s1020_s23, %s1313_s23   ;;  %s956_s22 = sphi %s1018_s22, %s1312_s22   ;;  %s952_s21 = sphi %s1016_s21, %s1311_s21  }
   0x7   : > { %p43_p0 = scmp.ne.s32.totalorder %s956_s22, %s952_s21  ;;  %p1295_p1 = scmp.eq.s32.totalorder %s1037_s25, 0 }
   0x8   : > { %p178_p3 = scmp.eq.s32.totalorder %s729_s26, 1  ;;  %p730_p5 = scmp.ge.s32.totalorder %s964_s24, 1 }
   0x9   : > { %p1046_p4 = por %p1295_p1, %p43_p0  ;;  %p185_p7 = scmp.lt.s32.totalorder %s964_s24, 3 }
   0xa   : > { %p1051_p6 = por %p178_p3, %p43_p0  ;;  %s966_s30 = smov [#allocation5]  }
   0xb   : > { %s1298_s27 = scalar_select %p1046_p4, 1, 0 }
   0xc   : > { %s1299_s28 = scalar_select %p1051_p6, 1, 0 }
   0xd   : > { %p1056_p8 = pnand %p730_p5, %p185_p7  ;;  %s200_s7 = sshll.u32 %s966_s30, 4  ;;  %s1060_s7 = int_to_ptr.vmem [resolvable:$true] %s200_s7 }
   0xe   : > { %s1072_s9 = sadd.s32 1, %s964_s24   ;;  %s30_s10 = sadd.s32 1, %s960_s23 }
   0xf   : > { %s1300_s29 = scalar_select %p1056_p8, 1, 0 }
  0x10   : > { %p773_p9 = pneg %p1056_p8  ;;  %s27_s11 = ssub.s32 %s964_s24, %s1072_s9 }
  0x11   : > { %s836_s14 = scalar_lea.hbm %s1290_s2, 512 }
  0x12   : > { %p1067_p11 = pnand %p773_p9, %p1295_p1  ;;  %p837_p12 = scmp.ne.s32.totalorder %s1290_s2, %s836_s14 }
  0x13   : > { %p843_p5 = scmp.lt.u32.totalorder %s836_s14, %s1290_s2 }
  0x14   : > { %p838_p13 = pneg %p1067_p11 }
  0x16   : > { %p839_p0 = pnand %p838_p13, %p837_p12 }
  0x18   : > { %p840_p3 = pneg %p839_p0 }
  0x1a   : > { %p845_p7 = pnand %p843_p5, %p840_p3 }
  0x1c   : > { %848 = shalt.err (!%p845_p7)
}
  0x1d   : > { %s849_s19 = scalar_lea.vmem %s1060_s7, 512  ;;  %p857_p2 = scmp.lt.s32.totalorder %s1060_s7, %s1060_s7 }
  0x1e   : > { %p850_p9 = scmp.ne.s32.totalorder %s1060_s7, %s849_s19  ;;  %p858_p6 = scmp.lt.s32.totalorder %s849_s19, %s849_s19 }
  0x20   : > { %p852_p10 = pnand %p850_p9, %p838_p13  ;;  %p859_p4 = por %p858_p6, %p857_p2 }
  0x22   : > { %p853_p1 = pneg %p852_p10 }
  0x24   : > { %p860_p8 = pnand %p859_p4, %p853_p1 }
  0x26   : > { %863 = shalt.err (!%p860_p8)
}
  0x27   : > { %s967_s20 = smov 256   ;;  %s968_s26 = smov 16  }
  0x28   : > { %776 = dma.hbm_to_vmem [thread:$0]  (!%p1067_p11), %s1290_s2, 512, %s1060_s7, [#allocation6], %s967_s20, %s967_s20, %s968_s26  }
  0x29   : > { %p28_p2 = scmp.eq.s32.totalorder %s27_s11, 0  ;;  %p37_p1 = scmp.ne.s32.totalorder %s960_s23, %s956_s22 }
  0x2a   : > { %p38_p4 = scmp.eq.s32.totalorder %s964_s24, 0  ;;  %p786_p6 = scmp.lt.s32.totalorder %s964_s24, 2 }
  0x2b   : > { %s1103_s13 = scalar_select %p28_p2, %s960_s23, %s30_s10  }
  0x2c   : > { %p39_p8 = por %p38_p4, %p37_p1  ;;  %p1302_p10 = scmp.eq.s32.totalorder %s1037_s25, 1 }
  0x2d   : > { %s223_s15 = sand.u32 1, %s960_s23   ;;  %s747_s16 = sshll.u32 %s964_s24, 8 }
  0x2e   : > { %p1107_p12 = por %p1302_p10, %p37_p1  ;;  %s733_s17 = sshll.u32 %s223_s15, 4 }
  0x2f   : > { %s1116_s19 = scalar_lea.hbm %s1288_s0, %s747_s16  ;;  %s227_s7 = scalar_lea.vmem [#allocation2], %s733_s17 }
  0x30   : > { %s235_s10 = sshll.u32 %s227_s7, 4  ;;  %p1118_p11 = pnand %p786_p6, %p39_p8  ;;  %s1122_s10 = int_to_ptr.vmem [resolvable:$true] %s235_s10 }
  0x31   : > { %s224_s20 = scalar_lea.sflag [#allocation3], %s223_s15  ;;  %s864_s26 = scalar_lea.hbm %s1116_s19, 256 }
  0x32   : > { %p865_p13 = scmp.ne.s32.totalorder %s1116_s19, %s864_s26  ;;  %p866_p0 = pneg %p1118_p11 }
  0x33   : > { %s869_s16 = scalar_lea.hbm %s1288_s0, 512  ;;  %p870_p7 = scmp.lt.u32.totalorder %s1116_s19, %s1288_s0 }
  0x34   : > { %p867_p3 = pnand %p866_p0, %p865_p13  ;;  %p871_p9 = scmp.lt.u32.totalorder %s869_s16, %s864_s26 }
  0x35   : > { %p873_p1 = scmp.lt.u32.totalorder %s864_s26, %s1116_s19 }
  0x36   : > { %p868_p5 = pneg %p867_p3  ;;  %p872_p2 = por %p871_p9, %p870_p7 }
  0x38   : > { %p874_p4 = por %p873_p1, %p872_p2 }
  0x3a   : > { %p875_p6 = pnand %p874_p4, %p868_p5 }
  0x3c   : > { %878 = shalt.err (!%p875_p6)
}
  0x3d   : > { %s879_s15 = scalar_lea.vmem %s1122_s10, 256  ;;  %s969_s18 = smov [#allocation2]  }
  0x3e   : > { %p880_p8 = scmp.ne.s32.totalorder %s1122_s10, %s879_s15  ;;  %s884_s7 = sshll.u32 %s969_s18, 4  ;;  %s885_s7 = int_to_ptr.vmem [resolvable:$false] %s884_s7 }
  0x3f   : > { %s886_s30 = scalar_lea.vmem %s885_s7, 512  ;;  %p887_p3 = scmp.lt.s32.totalorder %s1122_s10, %s885_s7 }
  0x40   : > { %p882_p10 = pnand %p880_p8, %p866_p0  ;;  %p888_p7 = scmp.lt.s32.totalorder %s886_s30, %s879_s15 }
  0x42   : > { %p883_p13 = pneg %p882_p10  ;;  %p889_p9 = por %p888_p7, %p887_p3 }
  0x44   : > { %p890_p2 = pnand %p889_p9, %p883_p13 }
  0x46   : > { %893 = shalt.err (!%p890_p2)
}
  0x47   : > { %780 = dma.hbm_to_vmem [thread:$0]  (!%p1118_p11), %s1116_s19, 256, %s1122_s10, %s224_s20  }
  0x48   : > { %p1305_p5 = scmp.ne.s32.totalorder %s1300_s29, 0 }
  0x49   : > { %s1152_s26 = sand.u32 (!%p1305_p5), 1, %s956_s22   ;;  %p1306_p0 = scmp.ne.s32.totalorder (!%p1305_p5), %s1298_s27, 0 }
  0x4a   : > { %244 = sbr.rel (%p1305_p5) target bundleno = 688 (0x2b0), region = 44  ;;  %s737_s12 = sshll.u32 (!%p1305_p5), %s1152_s26, 4 }
  0x4b   : > { %s247_s16 = scalar_lea.sflag (!%p1305_p5), [#allocation3], %s1152_s26  ;;  %s250_s17 = scalar_lea.vmem (!%p1305_p5), [#allocation2], %s737_s12 }
  0x51   : > { %939 = dma.done.wait (%p1306_p0), %s247_s16, 256  }
  0x52   : > { %941 = vsyncadd (%p1306_p0), %s247_s16, 4294967040  ;;  %p1307_p11 = scmp.eq.s32.totalorder %s1037_s25, 0 }
  0x54   : > { %943 = dma.done.wait (%p1307_p11), [#allocation6], 512   ;;  %p1308_p1 = pmov %p1307_p11 }
  0x55   : > { %v1166_v0 = vld [vmem:[%s250_s17] sm:$0xff]  ;;  %v1168_v1 = vld [vmem:[%s250_s17 + $0x8] sm:$0xff]  ;;  %s970_s29 = smov 16   ;;  %s971_s19 = smov 17   ;;  %v976_v4 = vmov 0.0   ;;  %v977_v5 = vmov 0   ;;  %v291_v7 = vlaneseq }
  0x56   : > { %945 = vsyncadd (%p1308_p1), [#allocation6], 4294966784  ;;  %v1171_v2 = vmax.f32 %v1166_v0, 0.0  ;;  %v1176_v3 = vmax.f32 %v1168_v1, 0.0  ;;  %s972_s27 = smov 15   ;;  %s973_s10 = smov 1   ;;  %539 = vmatprep.mubr.f32.mxu0 %v976_v4  ;;  %623 = vmatprep.mubr.f32.mxu1 %v976_v4 }
  0x57   : > { %s974_s11 = smov 127   ;;  %s975_s20 = smov 113   ;;  %834 = vset.pattern.permute.xlu0 %v977_v5  ;;  %835 = vset.pattern.permute.xlu1 %v977_v5  ;;  %v465_v6 = vld [vmem:[%s1291_s3] sm:$0xff]  ;;  %v299_v8 = vshrl.u32 %v291_v7, 7  ;;  %v1195_v9 = vand.u32 127, %v291_v7  ;;  %vm471_vm8 = vcmask 588800  }
  0x58   : > { %310 = vrot.lane.b32.xlu1 %v1171_v2, %s970_s29  ;;  %287 = vrot.lane.b32.xlu0 %v1171_v2, %s971_s19  ;;  %s978_s8 = smov 112   ;;  %s979_s15 = smov 111   ;;  %v318_v12 = vld [vmem:[#allocation5 + $0x1] ss:$8 sm:$0x3]  ;;  %vm555_vm9 = vcmask 64512  }
  0x59   : > { %v1197_v10 = vsub.s32 0, %v299_v8  ;;  %v1199_v11 = vsub.s32 1, %v299_v8  ;;  %v296_v13 = vld [vmem:[#allocation5] ss:$8 sm:$0x3]  ;;  %vm314_vm0 = vcmp.lt.s32.totalorder %v1195_v9, 16 }
  0x5a   : > { %vm293_vm1 = vcmp.lt.s32.totalorder %v1195_v9, 17  ;;  %v340_v30 = vld [vmem:[#allocation5 + $0x2] ss:$8 sm:$0x3]  ;;  %vm336_vm2 = vcmp.lt.s32.totalorder %v1195_v9, 15  ;;  %vm358_vm3 = vcmp.lt.s32.totalorder %v1195_v9, 1 }
  0x5b   : > { %v323_v16 = vrot.slane %v318_v12, %v1197_v10  ;;  %v301_v17 = vrot.slane %v296_v13, %v1197_v10  ;;  %v305_v18 = vrot.slane %v296_v13, %v1199_v11  ;;  %v327_v19 = vrot.slane %v318_v12, %v1199_v11  ;;  %v362_v31 = vld [vmem:[#allocation5 + $0x3] ss:$8 sm:$0x3]  ;;  %v384_v40 = vld [vmem:[#allocation5 + $0x5] ss:$8 sm:$0x3] }
  0x5c   : > { %312 = vrot.lane.b32.xlu1 %v1176_v3, %s970_s29  ;;  %289 = vrot.lane.b32.xlu0 %v1176_v3, %s971_s19  ;;  %v345_v36 = vrot.slane %v340_v30, %v1197_v10  ;;  %v349_v37 = vrot.slane %v340_v30, %v1199_v11  ;;  %v367_v38 = vrot.slane %v362_v31, %v1197_v10  ;;  %vm380_vm4 = vcmp.lt.s32.totalorder %v1195_v9, 127  ;;  %v406_v61 = vld [vmem:[#allocation5 + $0x6] ss:$8 sm:$0x3]  ;;  %s980_s7 = smov [#allocation7]  }
  0x5d   : > { %v371_v39 = vrot.slane %v362_v31, %v1199_v11  ;;  %v389_v47 = vrot.slane %v384_v40, %v1197_v10  ;;  %v393_v48 = vrot.slane %v384_v40, %v1199_v11  ;;  %v428_v62 = vld [vmem:[#allocation5 + $0x7] ss:$8 sm:$0x3]  ;;  %vm402_vm5 = vcmp.lt.s32.totalorder %v1195_v9, 113  ;;  %s898_s30 = sshll.u32 %s980_s7, 4  ;;  %s899_s30 = int_to_ptr.vmem [resolvable:$false] %s898_s30 }
  0x5e   : > { %v411_v7 = vrot.slane %v406_v61, %v1197_v10  ;;  %v415_v8 = vrot.slane %v406_v61, %v1199_v11  ;;  %vm424_vm6 = vcmp.lt.s32.totalorder %v1195_v9, 112  ;;  %v433_v12 = vrot.slane %v428_v62, %v1197_v10  ;;  %s900_s16 = scalar_lea.vmem %s899_s30, 512 }
  0x5f   : > { %v437_v13 = vrot.slane %v428_v62, %v1199_v11  ;;  %vm446_vm7 = vcmp.lt.s32.totalorder %v1195_v9, 111  ;;  %v464_v9 = vld [vmem:[%s1289_s1] sm:$0xff] }
  0x60   : > { %334 = vrot.lane.b32.xlu1 %v1176_v3, %s972_s27  ;;  %332 = vrot.lane.b32.xlu0 %v1171_v2, %s972_s27 }
  0x64   : > { %356 = vrot.lane.b32.xlu1 %v1176_v3, %s973_s10  ;;  %354 = vrot.lane.b32.xlu0 %v1171_v2, %s973_s10  ;;  %s748_s10 = sshll.u32 %s1037_s25, 8  ;;  %s635_s25 = scalar_lea.sflag [#allocation4], %s1152_s26 }
  0x65   : > { %s1244_s18 = scalar_lea.hbm %s1294_s6, %s748_s10 }
  0x68   : > { %378 = vrot.lane.b32.xlu1 %v1176_v3, %s974_s11  ;;  %376 = vrot.lane.b32.xlu0 %v1171_v2, %s974_s11  ;;  %s282_s11 = scalar_lea.vmem [#allocation7], %s737_s12 }
  0x6c   : > { %400 = vrot.lane.b32.xlu1 %v1176_v3, %s975_s20  ;;  %398 = vrot.lane.b32.xlu0 %v1171_v2, %s975_s20  ;;  %s649_s20 = sshll.u32 %s282_s11, 4  ;;  %s1246_s20 = int_to_ptr.vmem [resolvable:$true] %s649_s20 }
  0x6d   : > { %s894_s12 = scalar_lea.vmem %s1246_s20, 256  ;;  %p901_p10 = scmp.lt.s32.totalorder %s1246_s20, %s899_s30 }
  0x6e   : > { %p895_p4 = scmp.ne.s32.totalorder %s1246_s20, %s894_s12  ;;  %p902_p13 = scmp.lt.s32.totalorder %s900_s16, %s894_s12 }
  0x70   : > { %422 = vrot.lane.b32.xlu1 %v1176_v3, %s978_s8  ;;  %420 = vrot.lane.b32.xlu0 %v1171_v2, %s978_s8  ;;  %p896_p6 = pnand %p895_p4, %p1107_p12  ;;  %p903_p3 = por %p902_p13, %p901_p10 }
  0x72   : > { %p897_p8 = pneg %p896_p6 }
  0x74   : > { %444 = vrot.lane.b32.xlu1 %v1176_v3, %s979_s15  ;;  %442 = vrot.lane.b32.xlu0 %v1171_v2, %s979_s15  ;;  %p904_p7 = pnand %p903_p3, %p897_p8 }
  0x78   : > { %468 = vperm.xlu0 %834, %v465_v6  }
  0xca   : > { %v311_v14 = vpop.permute.xlu1 %310  ;;  %v288_v15 = vpop.permute.xlu0 %287 }
  0xce   : > { %v313_v20 = vpop.permute.xlu1 %312  ;;  %v290_v21 = vpop.permute.xlu0 %289 }
  0xcf   : > { %v315_v22 = vsel %vm314_vm0, %v311_v14, %v313_v20  ;;  %v316_v23 = vsel %vm314_vm0, %v313_v20, %v311_v14  ;;  %v294_v24 = vsel %vm293_vm1, %v288_v15, %v290_v21  ;;  %v295_v25 = vsel %vm293_vm1, %v290_v21, %v288_v15  ;;  %v450_v14 = vld [vmem:[#allocation5 + $0x10] ss:$8 sm:$0x3] }
  0xd0   : > { %v330_v26 = vmul.f32 %v323_v16, %v316_v23  ;;  %v308_v27 = vmul.f32 %v301_v17, %v295_v25  ;;  %v309_v28 = vmul.f32 %v305_v18, %v294_v24  ;;  %v331_v29 = vmul.f32 %v327_v19, %v315_v22 }
  0xd1   : > { %v455_v24 = vrot.slane %v450_v14, %v1197_v10  ;;  %v549_v10 = vld [vmem:[%s1293_s5] sm:$0xff] }
  0xd2   : > { %v335_v32 = vpop.permute.xlu1 %334  ;;  %v333_v33 = vpop.permute.xlu0 %332  ;;  %v749_v34 = vpack.c.bf16 %v331_v29, %v309_v28  ;;  %v751_v35 = vpack.c.bf16 %v330_v26, %v308_v27  ;;  %552 = vperm.xlu1 %835, %v549_v10  }
  0xd3   : > { %v337_v41 = vsel %vm336_vm2, %v333_v33, %v335_v32  ;;  %v338_v42 = vsel %vm336_vm2, %v335_v32, %v333_v33 }
  0xd4   : > { %750 = vmatprep.subr.bf16.mxu0 %v749_v34  ;;  %v352_v49 = vmul.f32 %v345_v36, %v338_v42  ;;  %v353_v50 = vmul.f32 %v349_v37, %v337_v41 }
  0xd5   : > { %752 = vmatpush1.bf16.msra.mxu0 %v751_v35 }
  0xd6   : > { %v357_v43 = vpop.permute.xlu1 %356  ;;  %v355_v44 = vpop.permute.xlu0 %354 }
  0xd7   : > { %v359_v45 = vsel %vm358_vm3, %v355_v44, %v357_v43  ;;  %v360_v46 = vsel %vm358_vm3, %v357_v43, %v355_v44 }
  0xd8   : > { %v374_v51 = vmul.f32 %v367_v38, %v360_v46  ;;  %v375_v52 = vmul.f32 %v371_v39, %v359_v45  ;;  %v548_v39 = vld [vmem:[%s1292_s4] sm:$0xff] }
  0xda   : > { %v379_v53 = vpop.permute.xlu1 %378  ;;  %v377_v54 = vpop.permute.xlu0 %376  ;;  %v753_v55 = vpack.c.bf16 %v375_v52, %v353_v50  ;;  %v755_v56 = vpack.c.bf16 %v374_v51, %v352_v49 }
  0xdb   : > { %v381_v57 = vsel %vm380_vm4, %v377_v54, %v379_v53  ;;  %v382_v58 = vsel %vm380_vm4, %v379_v53, %v377_v54 }
  0xdc   : > { %v396_v59 = vmul.f32 %v389_v47, %v381_v57  ;;  %v397_v60 = vmul.f32 %v393_v48, %v382_v58  ;;  %754 = vmatprep.subr.bf16.mxu0 %v753_v55 }
  0xdd   : > { %756 = vmatpush1.bf16.msra.mxu0 %v755_v56 }
  0xde   : > { %v401_v63 = vpop.permute.xlu1 %400  ;;  %v399_v4 = vpop.permute.xlu0 %398  ;;  %v757_v5 = vpack.c.bf16 %v397_v60, %v1176_v3  ;;  %v759_v6 = vpack.c.bf16 %v396_v59, %v1171_v2  ;;  %v459_v2 = vrot.slane %v450_v14, %v1199_v11 }
  0xdf   : > { %v403_v15 = vsel %vm402_vm5, %v399_v4, %v401_v63  ;;  %v404_v16 = vsel %vm402_vm5, %v401_v63, %v399_v4 }
  0xe0   : > { %758 = vmatprep.subr.bf16.mxu0 %v757_v5  ;;  %v418_v20 = vmul.f32 %v411_v7, %v403_v15  ;;  %v419_v21 = vmul.f32 %v415_v8, %v404_v16 }
  0xe1   : > { %760 = vmatpush1.bf16.msra.mxu0 %v759_v6 }
  0xe2   : > { %v423_v17 = vpop.permute.xlu1 %422  ;;  %v421_v18 = vpop.permute.xlu0 %420 }
  0xe3   : > { %v425_v3 = vsel %vm424_vm6, %v421_v18, %v423_v17  ;;  %v426_v19 = vsel %vm424_vm6, %v423_v17, %v421_v18 }
  0xe4   : > { %v440_v22 = vmul.f32 %v433_v12, %v425_v3  ;;  %v441_v23 = vmul.f32 %v437_v13, %v426_v19 }
  0xe6   : > { %v445_v25 = vpop.permute.xlu1 %444  ;;  %v761_v26 = vpack.c.bf16 %v441_v23, %v419_v21  ;;  %v443_v27 = vpop.permute.xlu0 %442  ;;  %v763_v28 = vpack.c.bf16 %v440_v22, %v418_v20 }
  0xe7   : > { %v447_v29 = vsel %vm446_vm7, %v443_v27, %v445_v25  ;;  %v448_v30 = vsel %vm446_vm7, %v445_v25, %v443_v27 }
  0xe8   : > { %762 = vmatprep.subr.bf16.mxu0 %v761_v26  ;;  %v463_v31 = vmul.f32 %v459_v2, %v448_v30  ;;  %v462_v32 = vmul.f32 %v455_v24, %v447_v29 }
  0xe9   : > { %764 = vmatpush1.bf16.msra.mxu0 %v763_v28 }
  0xea   : > { %491 = vmatprep.subr.mxu0 %v463_v31 }
  0xed   : > { %492 = vmatpush1.msra.mxu0 %v462_v32 }
  0xee   : > { %740 = vmatmul.mubr.msk.f32.vlgmr.msra.gmra.mrb[0].mxu0 %vm471_vm8, %v464_v9 }
  0xf7   : > { %v469_v11 = vpop.permute.xlu0 %468 }
 0x151   : > { %v553_v40 = vpop.permute.xlu1 %552 }
 0x1c1   : > { %v541_v33 = vpop.f32.mrb[0].mxu0 }
 0x1c2   : > { %v542_v34 = vadd.f32 %v541_v33, %v469_v11  ;;  %v543_v35 = vpop.f32.mrb[1].mxu0 }
 0x1c3   : > { %v544_v36 = vadd.f32 %v543_v35, %v469_v11 }
 0x1c4   : > { %v546_v38 = vmax.f32 %v542_v34, 0.0 }
 0x1c5   : > { %v547_v37 = vmax.f32 %v544_v36, 0.0 }
 0x1c7   : > { %559 = vmatprep.subr.mxu1 %v547_v37 }
 0x1c8   : > { %560 = vmatpush1.msra.mxu1 %v546_v38 }
 0x1c9   : > { %741 = vmatmul.mubr.msk.f32.vlgmr.msra.gmra.mrb[0].mxu1 %vm555_vm9, %v548_v39 }
 0x29c   : > { %v625_v41 = vpop.f32.mrb[0].mxu1 }
 0x29d   : > { %v626_v42 = vadd.f32 %v625_v41, %v553_v40  ;;  %v627_v43 = vpop.f32.mrb[1].mxu1 }
 0x29e   : > { %v628_v44 = vadd.f32 %v627_v43, %v553_v40 }
 0x29f   : > { %v630_v45 = vadd.f32 %v626_v42, %v1166_v0 }
 0x2a0   : > { %v631_v46 = vadd.f32 %v628_v44, %v1168_v1 }
 0x2a1   : > { %632 = vst [vmem:[%s282_s11] sm:$0xff] %v630_v45 }
 0x2a2   : > { %633 = vst [vmem:[%s282_s11 + $0x8] sm:$0xff] %v631_v46 }
 0x2a3   : > { %907 = shalt.err (!%p904_p7)
}
 0x2a4   : > { %s908_s26 = scalar_lea.hbm %s1244_s18, 256  ;;  %s912_s19 = scalar_lea.hbm %s1294_s6, 512 }
 0x2a5   : > { %p909_p9 = scmp.ne.s32.totalorder %s1244_s18, %s908_s26  ;;  %p913_p0 = scmp.lt.u32.totalorder %s1244_s18, %s1294_s6 }
 0x2a6   : > { %p914_p11 = scmp.lt.u32.totalorder %s912_s19, %s908_s26  ;;  %p916_p4 = scmp.lt.u32.totalorder %s908_s26, %s1244_s18 }
 0x2a7   : > { %p910_p2 = pnand %p909_p9, %p1107_p12 }
 0x2a8   : > { %p915_p1 = por %p914_p11, %p913_p0 }
 0x2a9   : > { %p911_p5 = pneg %p910_p2 }
 0x2aa   : > { %p917_p6 = por %p916_p4, %p915_p1 }
 0x2ac   : > { %p918_p8 = pnand %p917_p6, %p911_p5 }
 0x2ae   : > { %921 = shalt.err (!%p918_p8)
}
 0x2af   : > { %771 = dma.vmem_to_hbm [thread:$0]  (%p1107_p12), %s1246_s20, 256, %s1244_s18, %s635_s25  }
 0x2b0 PF: > { %s661_s11 = sand.u32 1, %s952_s21   ;;  %p1309_p10 = scmp.ne.s32.totalorder %s1299_s28, 0 }
 0x2b1   : > { %p1310_p13 = scmp.ge.s32.totalorder %s964_s24, 2  ;;  %s662_s8 = scalar_lea.sflag [#allocation4], %s661_s11 }
 0x2b3   : > { %p782_p3 = pnand %p1310_p13, %p1309_p10 }
 0x2b5   : > { %947 = dma.done.wait (!%p782_p3), %s662_s8, 256  }
 0x2b6   : > { %949 = vsyncadd (!%p782_p3), %s662_s8, 4294967040  ;;  %p20_p7 = scmp.ge.s32.totalorder %s1072_s9, 4   ;;  %s1311_s21 = smov %s956_s22 }
 0x2b7   : > { %s1312_s22 = smov %s960_s23  ;;  %s1313_s23 = smov %s1103_s13 }
 0x2b8   : > { %s1314_s24 = smov %s1072_s9  ;;  %22 = sbr.rel (!%p20_p7) target bundleno = 6 (0x6), region = 100 }
 0x2bf   :  { %667 = vsyncpa [#allocation3], 1 }
 0x2c0   :  { %669 = vsyncpa [#allocation3 + $0x1], 1 }
 0x2c1   :  { %670 = vsyncpa [#allocation6], 1 }
 0x2c2   :  { %671 = vsyncpa [#allocation4], 1 }
 0x2c3   :  { %673 = vsyncpa [#allocation4 + $0x1], 1 }

</bundles_post_ra>
